<compile_context>
chip_gen: v7x
topology: tpu7x:2x2x1
jax: 0.10.0
libtpu: 0.0.40
codegen_flags: <defaults>
</compile_context>

<pallas_src>
import functools

import jax
import jax.numpy as jnp
from jax.experimental import pallas as pl
from jax.experimental.pallas import tpu as pltpu

_EPS = 1e-7
_LANES = 128
_SUBLANES = 8
_NUM_CORE_SPLITS = 2  # leading "parallel" axis; uses both TCs on v7x


def _wbce_kernel(yt_ref, yp_ref, out_ref, acc_ref, *,
                 weight_positive, n_valid, block_rows, blocks_per_core):
    c = pl.program_id(0)   # core-split index ("parallel")
    i = pl.program_id(1)   # block index within this core's range ("arbitrary")

    @pl.when(i == 0)
    def _():
        acc_ref[...] = jnp.zeros_like(acc_ref)

    yt = yt_ref[...].astype(jnp.float32)
    yp = yp_ref[...].astype(jnp.float32)
    loss = -(weight_positive * yt * jnp.log(yp + _EPS)
             + (1.0 - yt) * jnp.log(1.0 - yp + _EPS))

    block_elems = block_rows * _LANES
    # Global element offset of this tile (unclamped -> duplicated / padded
    # tiles fall entirely beyond n_valid and are masked to zero below).
    start = (c * blocks_per_core + i) * block_elems
    block_end = start + block_elems

    # Fully-valid tiles: plain elementwise accumulate (no mask work at all).
    @pl.when(block_end <= n_valid)
    def _():
        acc_ref[...] += loss

    # Tiles containing padding (at most one real one, plus duplicated tiles
    # on the second core split when the block count is odd/small).
    @pl.when(block_end > n_valid)
    def _():
        row = jax.lax.broadcasted_iota(jnp.int32, (block_rows, _LANES), 0)
        lane = jax.lax.broadcasted_iota(jnp.int32, (block_rows, _LANES), 1)
        gidx = start + row * _LANES + lane
        acc_ref[...] += jnp.where(gidx < n_valid, loss, 0.0)

    @pl.when(i == blocks_per_core - 1)
    def _():
        # Fold the (block_rows, 128) accumulator into one (8, 128) tile; the
        # final cross-lane sum and divide-by-count happen in the wrapper.
        folded = jnp.sum(
            acc_ref[...].reshape(block_rows // _SUBLANES, _SUBLANES, _LANES),
            axis=0)
        out_ref[...] = folded


def weighted_bce_loss(y_true, y_pred, weight_positive, *, rows_per_tile=1024):
    """Mean weighted BCE over all elements of y_true / y_pred (same shape)."""
    assert y_true.shape == y_pred.shape
    n_valid = int(y_true.size)
    assert n_valid > 0

    # ---- glue: lane-dense (rows, 128) slab; pad only if not (8*128)-aligned.
    granule = _SUBLANES * _LANES  # 1024 elements
    pad = (-n_valid) % granule
    yt = jnp.ravel(y_true)
    yp = jnp.ravel(y_pred)
    if pad:
        # Pad values are irrelevant for correctness (masked in-kernel).
        yt = jnp.pad(yt, (0, pad))
        yp = jnp.pad(yp, (0, pad), constant_values=0.5)
    n_rows = (n_valid + pad) // _LANES           # multiple of 8

    yt2 = yt.reshape(n_rows, _LANES)
    yp2 = yp.reshape(n_rows, _LANES)

    rows_per_tile = max(_SUBLANES, (rows_per_tile // _SUBLANES) * _SUBLANES)
    block_rows = min(rows_per_tile, n_rows)
    n_blocks = pl.cdiv(n_rows, block_rows)
    blocks_per_core = pl.cdiv(n_blocks, _NUM_CORE_SPLITS)
    max_blk = n_blocks - 1

    def in_index(c, i, bpc=blocks_per_core, mb=max_blk):
        # Clamp so duplicated tiles (when the block count doesn't split
        # evenly across cores) re-read valid memory; they are masked out.
        return (jnp.minimum(c * bpc + i, mb), 0)

    in_spec = pl.BlockSpec((block_rows, _LANES), in_index)
    out_spec = pl.BlockSpec((_SUBLANES, _LANES), lambda c, i: (c, 0))

    kernel = functools.partial(
        _wbce_kernel,
        weight_positive=float(weight_positive),
        n_valid=n_valid,
        block_rows=block_rows,
        blocks_per_core=blocks_per_core,
    )

    partials = pl.pallas_call(
        kernel,
        out_shape=jax.ShapeDtypeStruct((_NUM_CORE_SPLITS * _SUBLANES, _LANES),
                                       jnp.float32),
        grid_spec=pltpu.PrefetchScalarGridSpec(
            num_scalar_prefetch=0,
            grid=(_NUM_CORE_SPLITS, blocks_per_core),
            in_specs=[in_spec, in_spec],
            out_specs=out_spec,
            scratch_shapes=[pltpu.VMEM((block_rows, _LANES), jnp.float32)],
        ),
        compiler_params=pltpu.CompilerParams(
            dimension_semantics=("parallel", "arbitrary"),
        ),
    )(yt2, yp2)

    # Tiny (16,128) cross-lane sum + mean scale in plain JAX glue.
    return jnp.sum(partials) * (1.0 / n_valid)


def _reference(y_true, y_pred, w):
    y_true = y_true.astype(jnp.float32)
    y_pred = y_pred.astype(jnp.float32)
    loss = -(w * y_true * jnp.log(y_pred + _EPS)
             + (1.0 - y_true) * jnp.log(1.0 - y_pred + _EPS))
    return jnp.mean(loss)


def _check(y_true, y_pred, w, **kw):
    out = jax.block_until_ready(weighted_bce_loss(y_true, y_pred, w, **kw))
    ref = _reference(y_true, y_pred, w)
    assert jnp.allclose(out, ref, rtol=1e-5, atol=1e-6), (out, ref)
    return out


if __name__ == "__main__":
    weight_positive = 2.0  # deterministic "parameter" from __init__

    key = jax.random.PRNGKey(0)
    k1, k2, k3, k4, k5, k6 = jax.random.split(key, 6)

    # Main case: NCHW-shaped targets / predictions.
    shape = (2, 4, 16, 16)
    y_true = (jax.random.uniform(k1, shape) > 0.5).astype(jnp.float32)
    y_pred = jax.random.uniform(k2, shape, minval=0.01, maxval=0.99)
    _check(y_true, y_pred, weight_positive)

    # Multi-block / both-core path (small rows_per_tile forces several tiles).
    shape2 = (1, 3, 64, 64)
    yt2 = (jax.random.uniform(k3, shape2) > 0.5).astype(jnp.float32)
    yp2 = jax.random.uniform(k4, shape2, minval=0.01, maxval=0.99)
    _check(yt2, yp2, weight_positive, rows_per_tile=16)

    # Ragged element count (exercises the in-kernel iota mask).
    shape3 = (3, 5, 7, 11)
    yt3 = (jax.random.uniform(k5, shape3) > 0.5).astype(jnp.float32)
    yp3 = jax.random.uniform(k6, shape3, minval=0.01, maxval=0.99)
    _check(yt3, yp3, weight_positive)

    print("KERNEL_OK")
</pallas_src>

<mosaic_0001>
module attributes {stable_mosaic.version = 11 : i64} {
  func.func @_wbce_kernel(%arg0: i32, %arg1: i32, %arg2: memref<16x128xf32, #tpu.memory_space<vmem>>, %arg3: memref<16x128xf32, #tpu.memory_space<vmem>>, %arg4: memref<8x128xf32, #tpu.memory_space<vmem>>, %arg5: memref<16x128xf32, #tpu.memory_space<vmem>>) attributes {dimension_semantics = [#tpu.dimension_semantics<parallel>, #tpu.dimension_semantics<arbitrary>], iteration_bounds = array<i64: 2, 1>, scalar_prefetch = 0 : i64, scratch_operands = 1 : i64, tpu.core_type = #tpu.core_type<tc>, window_params = [{transform_indices = @transform_0, window_bounds = array<i64: 16, 128>}, {transform_indices = @transform_1, window_bounds = array<i64: 16, 128>}, {transform_indices = @transform_2, window_bounds = array<i64: 8, 128>}]} {
    %c0_i32 = arith.constant 0 : i32
    %0 = arith.cmpi eq, %arg1, %c0_i32 : i32
    %1 = arith.extui %0 : i1 to i32
    %c0_i32_0 = arith.constant 0 : i32
    %2 = arith.cmpi ne, %1, %c0_i32_0 : i32
    scf.if %2 {
      %cst_16 = arith.constant 0.000000e+00 : f32
      %35 = vector.broadcast %cst_16 : f32 to vector<16x128xf32>
      %c0_17 = arith.constant 0 : index
      %c0_18 = arith.constant 0 : index
      %36 = vector.load %arg5[%c0_17, %c0_18] : memref<16x128xf32, #tpu.memory_space<vmem>>, vector<16x128xf32>
      tpu.vector_store %arg5[%c0_17, %c0_18], %35 {strides = array<i32>} : memref<16x128xf32, #tpu.memory_space<vmem>>, vector<16x128xf32>,
    } else {
    }
    %c0 = arith.constant 0 : index
    %c0_1 = arith.constant 0 : index
    %3 = vector.load %arg2[%c0, %c0_1] : memref<16x128xf32, #tpu.memory_space<vmem>>, vector<16x128xf32>
    %c0_2 = arith.constant 0 : index
    %c0_3 = arith.constant 0 : index
    %4 = vector.load %arg3[%c0_2, %c0_3] : memref<16x128xf32, #tpu.memory_space<vmem>>, vector<16x128xf32>
    %cst = arith.constant 2.000000e+00 : f32
    %5 = vector.broadcast %cst : f32 to vector<16x128xf32>
    %6 = arith.mulf %5, %3 : vector<16x128xf32>
    %cst_4 = arith.constant 1.000000e-07 : f32
    %7 = vector.broadcast %cst_4 : f32 to vector<16x128xf32>
    %8 = arith.addf %4, %7 : vector<16x128xf32>
    %9 = math.log %8 : vector<16x128xf32>
    %10 = arith.mulf %6, %9 : vector<16x128xf32>
    %cst_5 = arith.constant 1.000000e+00 : f32
    %11 = vector.broadcast %cst_5 : f32 to vector<16x128xf32>
    %12 = arith.subf %11, %3 : vector<16x128xf32>
    %cst_6 = arith.constant 1.000000e+00 : f32
    %13 = vector.broadcast %cst_6 : f32 to vector<16x128xf32>
    %14 = arith.subf %13, %4 : vector<16x128xf32>
    %cst_7 = arith.constant 1.000000e-07 : f32
    %15 = vector.broadcast %cst_7 : f32 to vector<16x128xf32>
    %16 = arith.addf %14, %15 : vector<16x128xf32>
    %17 = math.log %16 : vector<16x128xf32>
    %18 = arith.mulf %12, %17 : vector<16x128xf32>
    %19 = arith.addf %10, %18 : vector<16x128xf32>
    %cst_8 = arith.constant 0.000000e+00 : f32
    %20 = vector.broadcast %cst_8 : f32 to vector<16x128xf32>
    %21 = arith.subf %20, %19 : vector<16x128xf32>
    %c1_i32 = arith.constant 1 : i32
    %22 = arith.muli %arg0, %c1_i32 : i32
    %23 = arith.addi %22, %arg1 : i32
    %c2048_i32 = arith.constant 2048 : i32
    %24 = arith.muli %23, %c2048_i32 : i32
    %c2048_i32_9 = arith.constant 2048 : i32
    %25 = arith.addi %24, %c2048_i32_9 : i32
    %c2048_i32_10 = arith.constant 2048 : i32
    %26 = arith.cmpi sle, %25, %c2048_i32_10 : i32
    %27 = arith.extui %26 : i1 to i32
    %c0_i32_11 = arith.constant 0 : i32
    %28 = arith.cmpi ne, %27, %c0_i32_11 : i32
    scf.if %28 {
      %c0_16 = arith.constant 0 : index
      %c0_17 = arith.constant 0 : index
      %35 = vector.load %arg5[%c0_16, %c0_17] : memref<16x128xf32, #tpu.memory_space<vmem>>, vector<16x128xf32>
      %36 = arith.addf %35, %21 : vector<16x128xf32>
      %c0_18 = arith.constant 0 : index
      %c0_19 = arith.constant 0 : index
      %37 = vector.load %arg5[%c0_18, %c0_19] : memref<16x128xf32, #tpu.memory_space<vmem>>, vector<16x128xf32>
      tpu.vector_store %arg5[%c0_18, %c0_19], %36 {strides = array<i32>} : memref<16x128xf32, #tpu.memory_space<vmem>>, vector<16x128xf32>,
    } else {
    }
    %c2048_i32_12 = arith.constant 2048 : i32
    %29 = arith.cmpi sgt, %25, %c2048_i32_12 : i32
    %30 = arith.extui %29 : i1 to i32
    %c0_i32_13 = arith.constant 0 : i32
    %31 = arith.cmpi ne, %30, %c0_i32_13 : i32
    scf.if %31 {
      %35 = tpu.iota {dimensions = array<i32: 0>} : vector<16x128xi32>
      %36 = tpu.iota {dimensions = array<i32: 1>} : vector<16x128xi32>
      %c128_i32 = arith.constant 128 : i32
      %37 = vector.broadcast %c128_i32 : i32 to vector<16x128xi32>
      %38 = arith.muli %35, %37 : vector<16x128xi32>
      %39 = vector.broadcast %24 : i32 to vector<16x128xi32>
      %40 = arith.addi %39, %38 : vector<16x128xi32>
      %41 = arith.addi %40, %36 : vector<16x128xi32>
      %c0_16 = arith.constant 0 : index
      %c0_17 = arith.constant 0 : index
      %42 = vector.load %arg5[%c0_16, %c0_17] : memref<16x128xf32, #tpu.memory_space<vmem>>, vector<16x128xf32>
      %c2048_i32_18 = arith.constant 2048 : i32
      %43 = vector.broadcast %c2048_i32_18 : i32 to vector<16x128xi32>
      %44 = arith.cmpi slt, %41, %43 : vector<16x128xi32>
      %cst_19 = arith.constant 0.000000e+00 : f32
      %45 = vector.broadcast %cst_19 : f32 to vector<16x128xf32>
      %46 = arith.select %44, %21, %45 : vector<16x128xi1>, vector<16x128xf32>
      %47 = arith.addf %42, %46 : vector<16x128xf32>
      %c0_20 = arith.constant 0 : index
      %c0_21 = arith.constant 0 : index
      %48 = vector.load %arg5[%c0_20, %c0_21] : memref<16x128xf32, #tpu.memory_space<vmem>>, vector<16x128xf32>
      tpu.vector_store %arg5[%c0_20, %c0_21], %47 {strides = array<i32>} : memref<16x128xf32, #tpu.memory_space<vmem>>, vector<16x128xf32>,
    } else {
    }
    %c0_i32_14 = arith.constant 0 : i32
    %32 = arith.cmpi eq, %arg1, %c0_i32_14 : i32
    %33 = arith.extui %32 : i1 to i32
    %c0_i32_15 = arith.constant 0 : i32
    %34 = arith.cmpi ne, %33, %c0_i32_15 : i32
    scf.if %34 {
      %c0_16 = arith.constant 0 : index
      %c0_17 = arith.constant 0 : index
      %35 = vector.load %arg5[%c0_16, %c0_17] : memref<16x128xf32, #tpu.memory_space<vmem>>, vector<16x128xf32>
      %36 = vector.shape_cast %35 : vector<16x128xf32> to vector<2x8x128xf32>
      %cst_18 = arith.constant dense<0.000000e+00> : vector<8x128xf32>
      %37 = vector.multi_reduction <add>, %36, %cst_18 [0] : vector<2x8x128xf32> to vector<8x128xf32>
      %c0_19 = arith.constant 0 : index
      %c0_20 = arith.constant 0 : index
      %38 = vector.load %arg4[%c0_19, %c0_20] : memref<8x128xf32, #tpu.memory_space<vmem>>, vector<8x128xf32>
      tpu.vector_store %arg4[%c0_19, %c0_20], %37 {strides = array<i32>} : memref<8x128xf32, #tpu.memory_space<vmem>>, vector<8x128xf32>,
    } else {
    }
    return
  }
  func.func @transform_0(%arg0: i32, %arg1: i32) -> (i32, i32) {
    %c1_i32 = arith.constant 1 : i32
    %0 = arith.muli %arg0, %c1_i32 : i32
    %1 = arith.addi %0, %arg1 : i32
    %c0_i32 = arith.constant 0 : i32
    %2 = arith.minsi %1, %c0_i32 : i32
    %c0_i32_0 = arith.constant 0 : i32
    %c0_i32_1 = arith.constant 0 : i32
    return %2, %c0_i32_0 : i32, i32
  }
  func.func @transform_1(%arg0: i32, %arg1: i32) -> (i32, i32) {
    %c1_i32 = arith.constant 1 : i32
    %0 = arith.muli %arg0, %c1_i32 : i32
    %1 = arith.addi %0, %arg1 : i32
    %c0_i32 = arith.constant 0 : i32
    %2 = arith.minsi %1, %c0_i32 : i32
    %c0_i32_0 = arith.constant 0 : i32
    %c0_i32_1 = arith.constant 0 : i32
    return %2, %c0_i32_0 : i32, i32
  }
  func.func @transform_2(%arg0: i32, %arg1: i32) -> (i32, i32) {
    %c0_i32 = arith.constant 0 : i32
    %c0_i32_0 = arith.constant 0 : i32
    return %arg0, %c0_i32 : i32, i32
  }
}

</mosaic_0001>

<bundles_post_ra>
// kernel: tpu_custom_call.1
= control target key start
LH: loop header
LB: loop body
LE: loop exit
PB: predicated region body
PF: predicated region fallthrough
CT: control target
= control target key end

     0   :  { %7 = vsyncpa [#allocation4], 0  ;;  %s975_s0 = inlined_call_operand.hbm [shape: f32[16,128], index: 0, kind: input, shape index: {}]   ;;  %s976_s1 = inlined_call_operand.hbm [shape: f32[16,128], index: 1, kind: input, shape index: {}]   ;;  %s977_s2 = inlined_call_operand.hbm [shape: f32[16,128], index: 2, kind: output, shape index: {}]  }
   0x1   :  { %9 = vsyncpa [#allocation4 + $0x1], 0 }
   0x2   :  { %10 = vsyncpa [#allocation7], 0 }
   0x3   :  { %12 = vsyncpa [#allocation7 + $0x1], 0 }
   0x4   :  { %13 = vsyncpa [#allocation5], 0 }
   0x5   :  { %15 = vsyncpa [#allocation5 + $0x1], 0  ;;  %s752_s9 = smov 0   ;;  %s754_s10 = smov 0  }
   0x6   :  { %s756_s11 = smov 0   ;;  %s758_s12 = smov 0  }
   0x7   :  { %s760_s13 = smov 0   ;;  %s762_s14 = smov 0  }
   0x8   :  { %s764_s15 = smov 0   ;;  %s766_s16 = smov 0  }
   0x9 LB: > { %s437_s17 = sadd.s32 4294967295, %s729_s16   ;;  %s438_s18 = sadd.s32 4294967294, %s729_s16   ;;  %s729_s16 = sphi %s766_s16, %s21_s16   ;;  %s725_s15 = sphi %s764_s15, %s996_s15   ;;  %s721_s14 = sphi %s762_s14, %s995_s14   ;;  %s717_s13 = sphi %s760_s13, %s965_s13   ;;  %s713_s12 = sphi %s758_s12, %s994_s12   ;;  %s709_s11 = sphi %s756_s11, %s993_s11   ;;  %s705_s10 = sphi %s754_s10, %s992_s10   ;;  %s701_s9 = sphi %s752_s9, %s991_s9  }
   0xa   : > { %s33_s19 = sadd.s32 1, %s725_s15  ;;  %p698_p1 = scmp.ne.s32.totalorder %s717_s13, 0 }
   0xb   : > { %p35_p0 = scmp.ge.s32.totalorder %s33_s19, 2  ;;  %p54_p2 = scmp.eq.s32.totalorder %s729_s16, 0 }
   0xc   : > { %p59_p3 = scmp.ne.s32.totalorder %s717_s13, %s713_s12  ;;  %p60_p5 = scmp.eq.s32.totalorder %s437_s17, 0 }
   0xd   : > { %s998_s19 = smov (%p35_p0, %s33_s19), 0  ;;  %p798_p4 = por %p698_p1, %p54_p2 }
   0xe   : > { %p802_p6 = por %p60_p5, %p59_p3  ;;  %s101_s22 = ssub.s32 %s725_s15, %s998_s19 }
   0xf   : > { %p102_p7 = scmp.eq.s32.totalorder %s101_s22, 0  ;;  %s104_s23 = sadd.s32 1, %s709_s11 }
  0x10   : > { %s981_s21 = scalar_select %p802_p6, 1, 0 }
  0x11   : > { %s810_s24 = scalar_select %p102_p7, %s709_s11, %s104_s23  }
  0x12   : > { %p114_p8 = scmp.ne.s32.totalorder %s709_s11, %s705_s10  ;;  %p115_p9 = scmp.eq.s32.totalorder %s437_s17, 1 }
  0x13   : > { %p120_p10 = scmp.ne.s32.totalorder %s705_s10, %s701_s9  ;;  %p121_p11 = scmp.eq.s32.totalorder %s438_s18, 1 }
  0x14   : > { %p816_p12 = por %p115_p9, %p114_p8  ;;  %p477_p1 = scmp.lt.s32.totalorder %s729_s16, 2 }
  0x15   : > { %p821_p0 = por %p121_p11, %p120_p10  ;;  %s731_s27 = smov [#allocation3]  }
  0x16   : > { %s982_s25 = scalar_select %p816_p12, 1, 0 }
  0x17   : > { %s983_s26 = scalar_select %p821_p0, 1, 0 }
  0x18   : > { %s155_s28 = sshll.u32 %s731_s27, 4  ;;  %p828_p2 = pnand %p477_p1, %p798_p4  ;;  %s156_s28 = int_to_ptr.vmem [resolvable:$true] %s155_s28 }
  0x19   : > { %s562_s4 = scalar_lea.hbm %s975_s0, 256 }
  0x1a   : > { %p563_p3 = scmp.ne.s32.totalorder %s975_s0, %s562_s4  ;;  %p564_p5 = pneg %p828_p2 }
  0x1b   : > { %p569_p8 = scmp.lt.u32.totalorder %s562_s4, %s562_s4  ;;  %p571_p9 = scmp.lt.u32.totalorder %s562_s4, %s975_s0 }
  0x1c   : > { %p565_p7 = pnand %p564_p5, %p563_p3 }
  0x1d   : > { %p572_p10 = por %p571_p9, %p569_p8 }
  0x1e   : > { %p566_p4 = pneg %p565_p7 }
  0x20   : > { %p573_p11 = pnand %p572_p10, %p566_p4 }
  0x22   : > { %576 = shalt.err (!%p573_p11)
}
  0x23   : > { %s577_s12 = scalar_lea.vmem %s156_s28, 256  ;;  %s584_s17 = scalar_lea.vmem %s156_s28, 512 }
  0x24   : > { %p578_p1 = scmp.ne.s32.totalorder %s156_s28, %s577_s12  ;;  %p585_p12 = scmp.lt.s32.totalorder %s156_s28, %s156_s28 }
  0x25   : > { %p586_p6 = scmp.lt.s32.totalorder %s584_s17, %s577_s12 }
  0x26   : > { %p580_p13 = pnand %p578_p1, %p564_p5 }
  0x27   : > { %p587_p3 = por %p586_p6, %p585_p12 }
  0x28   : > { %p581_p0 = pneg %p580_p13 }
  0x2a   : > { %p588_p7 = pnand %p587_p3, %p581_p0 }
  0x2c   : > { %591 = shalt.err (!%p588_p7)
}
  0x2d   : > { %s732_s18 = smov 128   ;;  %s733_s20 = smov 8  }
  0x2e   : > { %469 = dma.hbm_to_vmem [thread:$0]  (!%p828_p2), %s975_s0, 256, %s156_s28, [#allocation4], %s732_s18, %s732_s18, %s733_s20  }
  0x2f   : > { %p447_p13 = scmp.ge.s32.totalorder %s729_s16, 1  ;;  %p187_p4 = scmp.lt.s32.totalorder %s729_s16, 3 }
  0x30   : > { %s734_s30 = smov [#allocation6]   ;;  %s592_s6 = scalar_lea.hbm %s976_s1, 256 }
  0x31   : > { %p859_p8 = pnand %p447_p13, %p187_p4  ;;  %s179_s3 = sshll.u32 %s734_s30, 4  ;;  %s180_s3 = int_to_ptr.vmem [resolvable:$true] %s179_s3 }
  0x32   : > { %p593_p6 = scmp.ne.s32.totalorder %s976_s1, %s592_s6  ;;  %p599_p9 = scmp.lt.u32.totalorder %s592_s6, %s592_s6 }
  0x33   : > { %s985_s27 = scalar_select %p859_p8, 1, 0 }
  0x34   : > { %p595_p12 = pnand %p593_p6, %p564_p5  ;;  %p601_p10 = scmp.lt.u32.totalorder %s592_s6, %s976_s1 }
  0x36   : > { %p596_p0 = pneg %p595_p12  ;;  %p602_p11 = por %p601_p10, %p599_p9 }
  0x38   : > { %p603_p1 = pnand %p602_p11, %p596_p0 }
  0x3a   : > { %606 = shalt.err (!%p603_p1)
}
  0x3b   : > { %s607_s17 = scalar_lea.vmem %s180_s3, 256  ;;  %s614_s22 = scalar_lea.vmem %s180_s3, 512 }
  0x3c   : > { %p608_p3 = scmp.ne.s32.totalorder %s180_s3, %s607_s17  ;;  %p615_p4 = scmp.lt.s32.totalorder %s180_s3, %s180_s3 }
  0x3d   : > { %p616_p8 = scmp.lt.s32.totalorder %s614_s22, %s607_s17 }
  0x3e   : > { %p610_p7 = pnand %p608_p3, %p564_p5 }
  0x3f   : > { %p617_p6 = por %p616_p8, %p615_p4 }
  0x40   : > { %p611_p13 = pneg %p610_p7 }
  0x42   : > { %p618_p12 = pnand %p617_p6, %p611_p13 }
  0x44   : > { %621 = shalt.err (!%p618_p12)
}
  0x45   : > { %472 = dma.hbm_to_vmem [thread:$0]  (!%p828_p2), %s976_s1, 256, %s180_s3, [#allocation7], %s732_s18, %s732_s18, %s733_s20  }
  0x46   : > { %p986_p0 = scmp.ne.s32.totalorder %s985_s27, 0 }
  0x47   : > { %s193_s4 = sand.u32 (!%p986_p0), 1, %s717_s13   ;;  %p987_p5 = scmp.ne.s32.totalorder (!%p986_p0), %s981_s21, 0 }
  0x48   : > { %191 = sbr.rel (%p986_p0) target bundleno = 154 (0x9a), region = 28  ;;  %s448_s5 = sshll.u32 (!%p986_p0), %s193_s4, 4 }
  0x49   : > { %s194_s6 = scalar_lea.sflag (!%p986_p0), [#allocation4], %s193_s4  ;;  %s197_s7 = scalar_lea.vmem (!%p986_p0), [#allocation3], %s448_s5 }
  0x4f   : > { %687 = dma.done.wait (%p987_p5), %s194_s6, 256  }
  0x50   : > { %689 = vsyncadd (%p987_p5), %s194_s6, 4294967040  ;;  %s203_s29 = scalar_lea.sflag [#allocation7], %s193_s4  ;;  %s206_s8 = scalar_lea.vmem [#allocation6], %s448_s5 }
  0x51   : > { %691 = dma.done.wait (%p987_p5), %s203_s29, 256  }
  0x52   : > { %693 = vsyncadd (%p987_p5), %s203_s29, 4294967040  ;;  %s229_s18 = sand.u32 1, %s705_s10   ;;  %s451_s20 = sshll.u32 %s721_s14, 11  ;;  %v735_v0 = vmov 0.0   ;;  %v248_v1 = vld [vmem:[%s206_s8] sm:$0xff]  ;;  %v249_v2 = vld [vmem:[%s206_s8 + $0x8] sm:$0xff] }
  0x53   : > { %s901_s27 = sshll.u32 %s229_s18, 3  ;;  %244 = vst [vmem:[#allocation2] sm:$0xff] %v735_v0  ;;  %245 = vst [vmem:[#allocation2 + $0x8] sm:$0xff] %v735_v0  ;;  %s905_s3 = sadd.s32 2048, %s451_s20  ;;  %v252_v3 = vadd.f32 1e-07, %v248_v1 }
  0x54   : > { %v253_v4 = vadd.f32 1e-07, %v249_v2  ;;  %v262_v5 = vsub.f32 1.0, %v248_v1  ;;  %v263_v6 = vsub.f32 1.0, %v249_v2  ;;  %v246_v9 = vld [vmem:[%s197_s7] sm:$0xff]  ;;  %v247_v10 = vld [vmem:[%s197_s7 + $0x8] sm:$0xff] }
  0x55   : > { %554 = vlog2.f32 %v252_v3  ;;  %v250_v12 = vmul.f32 2.0, %v246_v9  ;;  %v251_v14 = vmul.f32 2.0, %v247_v10  ;;  %v260_v17 = vsub.f32 1.0, %v246_v9  ;;  %s231_s21 = scalar_lea.vmem [#allocation8], %s901_s27  ;;  %p452_p2 = scmp.gt.s32.totalorder %s905_s3, 2048 }
  0x56   : > { %556 = vlog2.f32 %v253_v4  ;;  %v264_v7 = vadd.f32 1e-07, %v262_v5  ;;  %v265_v8 = vadd.f32 1e-07, %v263_v6  ;;  %v261_v19 = vsub.f32 1.0, %v247_v10 }
  0x58   : > { %558 = vlog2.f32 %v264_v7 }
  0x59   : > { %560 = vlog2.f32 %v265_v8 }
  0x5a   : > { %v283_v31 = vld [vmem:[#allocation2] sm:$0xff] (!%p452_p2)  ;;  %v284_v32 = vld [vmem:[#allocation2 + $0x8] sm:$0xff] (!%p452_p2) }
  0x5f   : > { %v555_v11 = vpop.eup %554 }
  0x60   : > { %v557_v13 = vpop.eup %556  ;;  %v255_v15 = vmul.f32 0.6931472, %v555_v11 }
  0x61   : > { %v257_v16 = vmul.f32 0.6931472, %v557_v13 }
  0x62   : > { %v559_v18 = vpop.eup %558  ;;  %v258_v21 = vmul.f32 %v255_v15, %v250_v12 }
  0x63   : > { %v561_v20 = vpop.eup %560  ;;  %v267_v22 = vmul.f32 0.6931472, %v559_v18  ;;  %v259_v23 = vmul.f32 %v257_v16, %v251_v14 }
  0x64   : > { %v269_v24 = vmul.f32 0.6931472, %v561_v20  ;;  %282 = sbr.rel (%p452_p2) target bundleno = 111 (0x6f), region = 44 }
  0x65   : > { %v270_v25 = vmul.f32 %v267_v22, %v260_v17 }
  0x66   : > { %v271_v26 = vmul.f32 %v269_v24, %v261_v19 }
  0x67   : > { %v272_v27 = vadd.f32 %v270_v25, %v258_v21 }
  0x68   : > { %v273_v28 = vadd.f32 %v271_v26, %v259_v23 }
  0x69   : > { %v274_v29 = vsub.f32 0.0, %v272_v27 }
  0x6a   : > { %v275_v30 = vsub.f32 0.0, %v273_v28 }
  0x6b   : > { %v285_v33 = vadd.f32 %v283_v31, %v274_v29 }
  0x6c   : > { %v286_v34 = vadd.f32 %v284_v32, %v275_v30 }
  0x6d   : > { %287 = vst [vmem:[#allocation2] sm:$0xff] %v285_v33 }
  0x6e   : > { %288 = vst [vmem:[#allocation2 + $0x8] sm:$0xff] %v286_v34 }
  0x6f PF: > { %p453_p8 = scmp.le.s32.totalorder %s905_s3, 2048 }
  0x70   : > { %v293_v35 = vlaneseq (!%p453_p8)  ;;  %v300_v37 = vstv (!%p453_p8), %s451_s20 }
  0x71   : > { %292 = sbr.rel (%p453_p8) target bundleno = 129 (0x81), region = 48 }
  0x72   : > { %v294_v36 = vshrl.u32 (!%p453_p8), %v293_v35, 7  ;;  %v297_v38 = vand.u32 (!%p453_p8), 127, %v293_v35 }
  0x74   : > { %v298_v39 = vmul.u32 (!%p453_p8), 128, %v294_v36  ;;  %v295_v40 = vadd.s32 (!%p453_p8), 8, %v294_v36  ;;  %v305_v45 = vld [vmem:[#allocation2] sm:$0xff] (!%p453_p8) }
  0x75   : > { %v306_v48 = vld [vmem:[#allocation2 + $0x8] sm:$0xff] (!%p453_p8) }
  0x76   : > { %v301_v41 = vadd.s32 (!%p453_p8), %v300_v37, %v298_v39  ;;  %v299_v42 = vmul.u32 (!%p453_p8), 128, %v295_v40 }
  0x78   : > { %v303_v43 = vadd.s32 %v301_v41, %v297_v38  ;;  %v302_v44 = vadd.s32 %v300_v37, %v299_v42 }
  0x7a   : > { %vm307_vm0 = vcmp.lt.s32.totalorder %v303_v43, 2048  ;;  %v304_v46 = vadd.s32 %v302_v44, %v297_v38 }
  0x7b   : > { %v309_v47 = vsel %vm307_vm0, %v274_v29, 0.0 }
  0x7c   : > { %v311_v49 = vadd.f32 %v309_v47, %v305_v45  ;;  %vm308_vm1 = vcmp.lt.s32.totalorder %v304_v46, 2048 }
  0x7d   : > { %v310_v50 = vsel %vm308_vm1, %v275_v30, 0.0 }
  0x7e   : > { %313 = vst [vmem:[#allocation2] sm:$0xff] %v311_v49  ;;  %v312_v51 = vadd.f32 %v310_v50, %v306_v48 }
  0x80   : > { %314 = vst [vmem:[#allocation2 + $0x8] sm:$0xff] %v312_v51 }
  0x81 PF: > { %s455_s28 = sshll.u32 %s721_s14, 7  ;;  %s336_s23 = sshll.u32 %s231_s21, 4  ;;  %s920_s23 = int_to_ptr.vmem [resolvable:$true] %s336_s23 }
  0x82   : > { %s916_s22 = scalar_lea.hbm %s977_s2, %s455_s28  ;;  %s323_s30 = scalar_lea.sflag [#allocation5], %s229_s18 }
  0x83   : > { %s622_s4 = scalar_lea.vmem %s920_s23, 128  ;;  %p988_p10 = scmp.ne.s32.totalorder %s982_s25, 0 }
  0x84   : > { %p623_p9 = scmp.ne.s32.totalorder %s920_s23, %s622_s4  ;;  %s736_s14 = smov [#allocation8]  }
  0x85   : > { %v318_v52 = vld [vmem:[#allocation2] sm:$0xff]  ;;  %s626_s5 = sshll.u32 %s736_s14, 4  ;;  %s627_s5 = int_to_ptr.vmem [resolvable:$false] %s626_s5 }
  0x86   : > { %p624_p11 = pnand %p623_p9, %p988_p10  ;;  %s628_s6 = scalar_lea.vmem %s627_s5, 256 }
  0x87   : > { %v319_v53 = vld [vmem:[#allocation2 + $0x8] sm:$0xff]  ;;  %p629_p3 = scmp.lt.s32.totalorder %s920_s23, %s627_s5  ;;  %p630_p7 = scmp.lt.s32.totalorder %s628_s6, %s622_s4 }
  0x88   : > { %v320_v54 = vadd.f32 %v319_v53, %v318_v52  ;;  %p625_p1 = pneg %p624_p11 }
  0x89   : > { %p631_p13 = por %p630_p7, %p629_p3 }
  0x8a   : > { %321 = vst [vmem:[%s231_s21] sm:$0xff] %v320_v54 }
  0x8b   : > { %p632_p4 = pnand %p631_p13, %p625_p1 }
  0x8d   : > { %635 = shalt.err (!%p632_p4)
}
  0x8e   : > { %s636_s7 = scalar_lea.hbm %s916_s22, 128  ;;  %s640_s18 = scalar_lea.hbm %s977_s2, 256 }
  0x8f   : > { %p637_p6 = scmp.ne.s32.totalorder %s916_s22, %s636_s7  ;;  %p641_p5 = scmp.lt.u32.totalorder %s916_s22, %s977_s2 }
  0x90   : > { %p642_p2 = scmp.lt.u32.totalorder %s640_s18, %s636_s7  ;;  %p644_p9 = scmp.lt.u32.totalorder %s636_s7, %s916_s22 }
  0x91   : > { %p638_p12 = pnand %p637_p6, %p988_p10 }
  0x92   : > { %p643_p8 = por %p642_p2, %p641_p5 }
  0x93   : > { %p639_p0 = pneg %p638_p12 }
  0x94   : > { %p645_p11 = por %p644_p9, %p643_p8 }
  0x96   : > { %p646_p1 = pnand %p645_p11, %p639_p0 }
  0x98   : > { %649 = shalt.err (!%p646_p1)
}
  0x99   : > { %464 = dma.vmem_to_hbm [thread:$0]  (%p988_p10), %s920_s23, 128, %s916_s22, %s323_s30  }
  0x9a PF: > { %s348_s3 = sand.u32 1, %s701_s9   ;;  %p989_p3 = scmp.ne.s32.totalorder %s983_s26, 0 }
  0x9b   : > { %p990_p7 = scmp.ge.s32.totalorder %s729_s16, 2  ;;  %s349_s21 = scalar_lea.sflag [#allocation5], %s348_s3 }
  0x9d   : > { %p474_p13 = pnand %p990_p7, %p989_p3 }
  0x9f   : > { %695 = dma.done.wait (!%p474_p13), %s349_s21, 128  }
  0xa0   : > { %697 = vsyncadd (!%p474_p13), %s349_s21, 4294967168  ;;  %s21_s16 = sadd.s32 1, %s729_s16   ;;  %s991_s9 = smov %s705_s10 }
  0xa1   : > { %p18_p4 = scmp.ge.s32.totalorder %s21_s16, 4   ;;  %s992_s10 = smov %s709_s11 }
  0xa2   : > { %s993_s11 = smov %s810_s24  ;;  %s994_s12 = smov %s717_s13 }
  0xa3   : > { %s965_s13 = smov 0   ;;  %s995_s14 = smov %s725_s15 }
  0xa4   : > { %s996_s15 = smov %s998_s19  ;;  %20 = sbr.rel (!%p18_p4) target bundleno = 9 (0x9), region = 102 }
  0xab   :  { %354 = vsyncpa [#allocation4], 1 }
  0xac   :  { %356 = vsyncpa [#allocation4 + $0x1], 1 }
  0xad   :  { %357 = vsyncpa [#allocation7], 1 }
  0xae   :  { %359 = vsyncpa [#allocation7 + $0x1], 1 }
  0xaf   :  { %360 = vsyncpa [#allocation5], 1 }
  0xb0   :  { %362 = vsyncpa [#allocation5 + $0x1], 1 }

</bundles_post_ra>
